<compile_context>
chip_gen: v5e
topology: v5e:2x2
jax: 0.10.0
libtpu: 0.0.40
codegen_flags: <defaults>
</compile_context>

<pallas_src>
import math

import jax
import jax.numpy as jnp
from jax.experimental import pallas as pl
from jax.experimental.pallas import tpu as pltpu

IN_FEATURES = 400
HIDDEN = 25
OUT_FEATURES = 10
OUT_PAD = 128           # lane-dense padded width of the fused MXU weight operand
SMALL_BATCH_MAX = 2048  # <= this: single grid-less invocation, x fully resident
BATCH_TILE_MAX = 4096   # rows per grid step cap on the tiled (large-batch) path


def _round_up(n, m):
    return ((n + m - 1) // m) * m


def fused_linear_kernel(x_ref, w_ref, b_ref, o_ref):
    # x_ref: [TB, 400]; w_ref: [400, 128]; b_ref: [1, 128]; o_ref: [TB, 10]
    acc = jnp.dot(x_ref[...], w_ref[...], preferred_element_type=jnp.float32)
    acc = acc + b_ref[...]
    o_ref[...] = acc[:, :OUT_FEATURES].astype(o_ref.dtype)


def _fuse_params(w1, b1, w2, b2):
    """Collapse the two bias+linear layers into one affine map; pad the fused
    weight/bias to a lane-dense 128 columns for the MXU operand."""
    hi = jax.lax.Precision.HIGHEST
    w_fused = jnp.dot(w1, w2, precision=hi)          # [400, 10]
    b_fused = jnp.dot(b1, w2, precision=hi) + b2     # [1, 10]
    w_fused = jnp.pad(w_fused, ((0, 0), (0, OUT_PAD - w_fused.shape[1])))
    b_fused = jnp.pad(b_fused, ((0, 0), (0, OUT_PAD - b_fused.shape[1])))
    return w_fused, b_fused


@jax.jit
def pytorch_forward(x, w1, b1, w2, b2):
    """x: [B, 400] f32. Weights stored [in, out] (W^T of PyTorch), biases [1, out]."""
    B = x.shape[0]
    w_f, b_f = _fuse_params(w1, b1, w2, b2)

    if B <= SMALL_BATCH_MAX:
        # Single invocation, no grid / pipeline machinery: everything
        # (x <= ~3.2 MB + tiny weights) lives in VMEM for the call.
        return pl.pallas_call(
            fused_linear_kernel,
            out_shape=jax.ShapeDtypeStruct((B, OUT_FEATURES), jnp.float32),
        )(x, w_f, b_f)

    # Large batch: tile rows (no padding of x — Pallas masks the ragged last
    # block), keep the tiny fused weight/bias resident across the grid.
    # Tile chosen so the grid always has >= 2 steps (both TCs busy on v7x)
    # and tile <= 4096 rows (double-buffered x tile <= ~12.8 MB of VMEM).
    tile = min(BATCH_TILE_MAX, _round_up(pl.cdiv(B, 2), 8))
    n_tiles = pl.cdiv(B, tile)

    return pl.pallas_call(
        fused_linear_kernel,
        out_shape=jax.ShapeDtypeStruct((B, OUT_FEATURES), jnp.float32),
        grid=(n_tiles,),
        in_specs=[
            pl.BlockSpec((tile, IN_FEATURES), lambda i: (i, 0)),
            pl.BlockSpec((IN_FEATURES, OUT_PAD), lambda i: (0, 0)),
            pl.BlockSpec((1, OUT_PAD), lambda i: (0, 0)),
        ],
        out_specs=pl.BlockSpec((tile, OUT_FEATURES), lambda i: (i, 0)),
        compiler_params=pltpu.CompilerParams(
            dimension_semantics=("parallel",),  # 2 TCs on v7x; harmless on v5e/v6e
        ),
    )(x, w_f, b_f)


def init_linear_params(key, in_features, out_features):
    """Deterministic init mimicking PyTorch nn.Linear defaults
    (Kaiming-uniform weight, uniform bias in +-1/sqrt(fan_in)).
    Weight is stored as [in, out] (i.e. W^T relative to PyTorch's [out, in])."""
    kw, kb = jax.random.split(key)
    bound = 1.0 / math.sqrt(in_features)
    w = jax.random.uniform(kw, (in_features, out_features), jnp.float32, -bound, bound)
    b = jax.random.uniform(kb, (1, out_features), jnp.float32, -bound, bound)
    return w, b


def _reference(x, w1, b1, w2, b2):
    hi = jax.lax.Precision.HIGHEST
    return jnp.dot(jnp.dot(x, w1, precision=hi) + b1, w2, precision=hi) + b2


if __name__ == "__main__":
    key = jax.random.PRNGKey(0)
    k_x, k_l1, k_l2, k_xm, k_xb = jax.random.split(key, 5)

    w1, b1 = init_linear_params(k_l1, IN_FEATURES, HIDDEN)
    w2, b2 = init_linear_params(k_l2, HIDDEN, OUT_FEATURES)

    # Small batch -> grid-less single-invocation path.
    batch = 8
    x = jax.random.normal(k_x, (batch, IN_FEATURES), jnp.float32)
    out = jax.block_until_ready(pytorch_forward(x, w1, b1, w2, b2))
    ref = _reference(x, w1, b1, w2, b2)
    assert out.shape == (batch, OUT_FEATURES)
    assert jnp.allclose(out, ref, atol=1e-4, rtol=1e-4)

    # Mid-size batch (previously tiled+padded) -> now also grid-less, x resident.
    batch_mid = 600
    xm = jax.random.normal(k_xm, (batch_mid, IN_FEATURES), jnp.float32)
    out_m = jax.block_until_ready(pytorch_forward(xm, w1, b1, w2, b2))
    ref_m = _reference(xm, w1, b1, w2, b2)
    assert out_m.shape == (batch_mid, OUT_FEATURES)
    assert jnp.allclose(out_m, ref_m, atol=1e-4, rtol=1e-4)

    # Large batch -> tiled path (2 grid steps, ragged last block, no x pad).
    batch_big = 2600
    xb = jax.random.normal(k_xb, (batch_big, IN_FEATURES), jnp.float32)
    out_b = jax.block_until_ready(pytorch_forward(xb, w1, b1, w2, b2))
    ref_b = _reference(xb, w1, b1, w2, b2)
    assert out_b.shape == (batch_big, OUT_FEATURES)
    assert jnp.allclose(out_b, ref_b, atol=1e-4, rtol=1e-4)

    print("KERNEL_OK")
</pallas_src>

<mosaic_0001>
module attributes {stable_mosaic.version = 11 : i64} {
  func.func @fused_linear_kernel(%arg0: memref<8x400xf32, #tpu.memory_space<vmem>>, %arg1: memref<400x128xf32, #tpu.memory_space<vmem>>, %arg2: memref<1x128xf32, #tpu.memory_space<vmem>>, %arg3: memref<8x10xf32, #tpu.memory_space<vmem>>) attributes {dimension_semantics = [], scalar_prefetch = 0 : i64, scratch_operands = 0 : i64, tpu.core_type = #tpu.core_type<tc>} {
    %c0 = arith.constant 0 : index
    %c0_0 = arith.constant 0 : index
    %0 = vector.load %arg0[%c0, %c0_0] : memref<8x400xf32, #tpu.memory_space<vmem>>, vector<8x400xf32>
    %c0_1 = arith.constant 0 : index
    %c0_2 = arith.constant 0 : index
    %1 = vector.load %arg1[%c0_1, %c0_2] : memref<400x128xf32, #tpu.memory_space<vmem>>, vector<400x128xf32>
    %cst = arith.constant dense<0.000000e+00> : vector<8x128xf32>
    %2 = tpu.matmul %0, %1, %cst {dimension_numbers = #tpu.dot_dimension_numbers<[1], [0], [0], [1], [0, 0, 1, 1], [], []>} : vector<8x400xf32>, vector<400x128xf32>, vector<8x128xf32> -> vector<8x128xf32>
    %c0_3 = arith.constant 0 : index
    %c0_4 = arith.constant 0 : index
    %3 = vector.load %arg2[%c0_3, %c0_4] : memref<1x128xf32, #tpu.memory_space<vmem>>, vector<1x128xf32>
    %4 = vector.broadcast %3 : vector<1x128xf32> to vector<8x128xf32>
    %5 = arith.addf %2, %4 : vector<8x128xf32>
    %6 = vector.extract_strided_slice %5 {offsets = [0, 0], sizes = [8, 10], strides = [1, 1]} : vector<8x128xf32> to vector<8x10xf32>
    %c0_5 = arith.constant 0 : index
    %c0_6 = arith.constant 0 : index
    %7 = vector.load %arg3[%c0_5, %c0_6] : memref<8x10xf32, #tpu.memory_space<vmem>>, vector<8x10xf32>
    tpu.vector_store %arg3[%c0_5, %c0_6], %6 {strides = array<i32>} : memref<8x10xf32, #tpu.memory_space<vmem>>, vector<8x10xf32>,
    return
  }
}

</mosaic_0001>

<bundles_post_ra>
// kernel: pytorch_forward.1
= control target key start
LH: loop header
LB: loop body
LE: loop exit
PB: predicated region body
PF: predicated region fallthrough
CT: control target
= control target key end

     0   :  { %vm73_vm0 = vcmask 130048   ;;  %s393_s0 = inlined_call_operand.vmem [shape: f32[8,400], index: 0, kind: input, shape index: {}]   ;;  %s394_s1 = inlined_call_operand.vmem [shape: f32[400,128], index: 1, kind: input, shape index: {}]   ;;  %s395_s2 = inlined_call_operand.vmem [shape: f32[1,128], index: 2, kind: input, shape index: {}]   ;;  %s396_s3 = inlined_call_operand.hbm [shape: f32[8,10], index: 3, kind: output, shape index: {}]  }
   0x1   :  { %v66_v0 = vld [vmem:[%s394_s1 + $0x178] sm:$0xff]  ;;  %v65_v2 = vld [vmem:[%s394_s1 + $0x170] sm:$0xff]  ;;  %v64_v5 = vld [vmem:[%s394_s1 + $0x168] sm:$0xff] }
   0x2   :  { %v34_v1 = vld [vmem:[%s394_s1 + $0x78] sm:$0xff]  ;;  %117 = vmatpush.msra.mxu2 %v66_v0  ;;  %v33_v3 = vld [vmem:[%s394_s1 + $0x70] sm:$0xff]  ;;  %v32_v6 = vld [vmem:[%s394_s1 + $0x68] sm:$0xff] }
   0x3   :  { %77 = vmatpush.msra.mxu0 %v34_v1  ;;  %v50_v4 = vld [vmem:[%s394_s1 + $0xf8] sm:$0xff]  ;;  %v49_v7 = vld [vmem:[%s394_s1 + $0xf0] sm:$0xff]  ;;  %v48_v8 = vld [vmem:[%s394_s1 + $0xe8] sm:$0xff] }
   0x4   :  { %97 = vmatpush.msra.mxu1 %v50_v4  ;;  %118 = vmatpush.msra.mxu2 %v65_v2  ;;  %v63_v9 = vld [vmem:[%s394_s1 + $0x160] sm:$0xff]  ;;  %v62_v12 = vld [vmem:[%s394_s1 + $0x158] sm:$0xff]  ;;  %v61_v15 = vld [vmem:[%s394_s1 + $0x150] sm:$0xff] }
   0x5   :  { %78 = vmatpush.msra.mxu0 %v33_v3  ;;  %v31_v10 = vld [vmem:[%s394_s1 + $0x60] sm:$0xff]  ;;  %v30_v13 = vld [vmem:[%s394_s1 + $0x58] sm:$0xff]  ;;  %v29_v16 = vld [vmem:[%s394_s1 + $0x50] sm:$0xff] }
   0x6   :  { %98 = vmatpush.msra.mxu1 %v49_v7  ;;  %119 = vmatpush.msra.mxu2 %v64_v5  ;;  %v47_v11 = vld [vmem:[%s394_s1 + $0xe0] sm:$0xff]  ;;  %v46_v14 = vld [vmem:[%s394_s1 + $0xd8] sm:$0xff]  ;;  %v45_v17 = vld [vmem:[%s394_s1 + $0xd0] sm:$0xff] }
   0x7   :  { %79 = vmatpush.msra.mxu0 %v32_v6  ;;  %v60_v18 = vld [vmem:[%s394_s1 + $0x148] sm:$0xff]  ;;  %v59_v21 = vld [vmem:[%s394_s1 + $0x140] sm:$0xff]  ;;  %v58_v24 = vld [vmem:[%s394_s1 + $0x138] sm:$0xff] }
   0x8   :  { %99 = vmatpush.msra.mxu1 %v48_v8  ;;  %120 = vmatpush.msra.mxu2 %v63_v9  ;;  %v28_v19 = vld [vmem:[%s394_s1 + $0x48] sm:$0xff]  ;;  %v27_v22 = vld [vmem:[%s394_s1 + $0x40] sm:$0xff]  ;;  %v26_v25 = vld [vmem:[%s394_s1 + $0x38] sm:$0xff] }
   0x9   :  { %80 = vmatpush.msra.mxu0 %v31_v10  ;;  %v44_v20 = vld [vmem:[%s394_s1 + $0xc8] sm:$0xff]  ;;  %v43_v23 = vld [vmem:[%s394_s1 + $0xc0] sm:$0xff]  ;;  %v42_v26 = vld [vmem:[%s394_s1 + $0xb8] sm:$0xff] }
   0xa   :  { %100 = vmatpush.msra.mxu1 %v47_v11  ;;  %121 = vmatpush.msra.mxu2 %v62_v12  ;;  %v68_v27 = vld [vmem:[%s394_s1 + $0x188] sm:$0xff]  ;;  %v57_v28 = vld [vmem:[%s394_s1 + $0x130] sm:$0xff]  ;;  %v67_v30 = vld [vmem:[%s394_s1 + $0x180] sm:$0xff] }
   0xb   :  { %81 = vmatpush.msra.mxu0 %v30_v13  ;;  %v25_v29 = vld [vmem:[%s394_s1 + $0x30] sm:$0xff]  ;;  %151 = vmatpush.msra.mxu3 %v68_v27  ;;  %v56_v31 = vld [vmem:[%s394_s1 + $0x128] sm:$0xff]  ;;  %v18_v33 = vld [vmem:[%s393_s0 + $0x18] sm:$0xff] }
   0xc   :  { %101 = vmatpush.msra.mxu1 %v46_v14  ;;  %122 = vmatpush.msra.mxu2 %v61_v15  ;;  %v41_v32 = vld [vmem:[%s394_s1 + $0xb0] sm:$0xff]  ;;  %v24_v34 = vld [vmem:[%s394_s1 + $0x28] sm:$0xff] }
   0xd   :  { %82 = vmatpush.msra.mxu0 %v29_v16  ;;  %152 = vmatpush.msra.mxu3 %v67_v30 }
   0xe   :  { %102 = vmatpush.msra.mxu1 %v45_v17  ;;  %123 = vmatpush.msra.mxu2 %v60_v18 }
   0xf   :  { %83 = vmatpush.msra.mxu0 %v28_v19 }
  0x10   :  { %103 = vmatpush.msra.mxu1 %v44_v20  ;;  %124 = vmatpush.msra.mxu2 %v59_v21 }
  0x11   :  { %84 = vmatpush.msra.mxu0 %v27_v22 }
  0x12   :  { %104 = vmatpush.msra.mxu1 %v43_v23  ;;  %125 = vmatpush.msra.mxu2 %v58_v24 }
  0x13   :  { %85 = vmatpush.msra.mxu0 %v26_v25 }
  0x14   :  { %105 = vmatpush.msra.mxu1 %v42_v26 }
  0x15   :  { %8 = vsyncpa [#allocation3], 0  ;;  %126 = vmatpush.msra.mxu2 %v57_v28  ;;  %86 = vmatpush.msra.mxu0 %v25_v29  ;;  %v40_v35 = vld [vmem:[%s394_s1 + $0xa8] sm:$0xff]  ;;  %v55_v36 = vld [vmem:[%s394_s1 + $0x120] sm:$0xff]  ;;  %vm157_vm1 = vcmask 80896  }
  0x16   :  { %106 = vmatpush.msra.mxu1 %v41_v32  ;;  %v23_v37 = vld [vmem:[%s394_s1 + $0x20] sm:$0xff]  ;;  %175 = vmatmul.msk.f32.vlgmr.msra.gmra.mxu3 %vm73_vm0, %v18_v33  ;;  %v54_v39 = vld [vmem:[%s394_s1 + $0x118] sm:$0xff]  ;;  %v53_v42 = vld [vmem:[%s394_s1 + $0x110] sm:$0xff] }
  0x17   :  { %127 = vmatpush.msra.mxu2 %v56_v31  ;;  %87 = vmatpush.msra.mxu0 %v24_v34  ;;  %v39_v38 = vld [vmem:[%s394_s1 + $0xa0] sm:$0xff]  ;;  %v22_v40 = vld [vmem:[%s394_s1 + $0x18] sm:$0xff]  ;;  %v21_v43 = vld [vmem:[%s394_s1 + $0x10] sm:$0xff] }
  0x18   :  { %107 = vmatpush.msra.mxu1 %v40_v35  ;;  %v38_v41 = vld [vmem:[%s394_s1 + $0x98] sm:$0xff]  ;;  %v37_v44 = vld [vmem:[%s394_s1 + $0x90] sm:$0xff]  ;;  %v52_v45 = vld [vmem:[%s394_s1 + $0x108] sm:$0xff] }
  0x19   :  { %128 = vmatpush.msra.mxu2 %v55_v36  ;;  %88 = vmatpush.msra.mxu0 %v23_v37  ;;  %v20_v46 = vld [vmem:[%s394_s1 + $0x8] sm:$0xff]  ;;  %v51_v48 = vld [vmem:[%s394_s1 + $0x100] sm:$0xff]  ;;  %v17_v50 = vld [vmem:[%s393_s0 + $0x10] sm:$0xff] }
  0x1a   :  { %108 = vmatpush.msra.mxu1 %v39_v38  ;;  %v36_v47 = vld [vmem:[%s394_s1 + $0x88] sm:$0xff]  ;;  %v19_v49 = vld [vmem:[%s394_s1] sm:$0xff] }
  0x1b   :  { %129 = vmatpush.msra.mxu2 %v54_v39  ;;  %89 = vmatpush.msra.mxu0 %v22_v40  ;;  %v15_v51 = vld [vmem:[%s393_s0] sm:$0xff]  ;;  %v16_v53 = vld [vmem:[%s393_s0 + $0x8] sm:$0xff]  ;;  %s166_s0 = sshll.u32 %s396_s3, 4  ;;  %s167_s0 = int_to_ptr.hbm [resolvable:$true] %s166_s0 }
  0x1c   :  { %109 = vmatpush.msra.mxu1 %v38_v41  ;;  %v35_v52 = vld [vmem:[%s394_s1 + $0x80] sm:$0xff]  ;;  %s204_s1 = smov [#allocation2]  }
  0x1d   :  { %130 = vmatpush.msra.mxu2 %v53_v42  ;;  %90 = vmatpush.msra.mxu0 %v21_v43  ;;  %v177_v54 = vld [vmem:[%s395_s2] ss:$0 sm:$0xff]  ;;  %s164_s14 = sshll.u32 %s204_s1, 4  ;;  %s165_s14 = int_to_ptr.vmem [resolvable:$true] %s164_s14 }
  0x1e   :  { %110 = vmatpush.msra.mxu1 %v37_v44 }
  0x1f   :  { %131 = vmatpush.msra.mxu2 %v52_v45  ;;  %91 = vmatpush.msra.mxu0 %v20_v46 }
  0x20   :  { %111 = vmatpush.msra.mxu1 %v36_v47 }
  0x21   :  { %132 = vmatpush.msra.mxu2 %v51_v48  ;;  %92 = vmatpush.msra.mxu0 %v19_v49 }
  0x22   :  { %133 = vmatmul.f32.vlgmr.msra.gmra.mxu2 %v17_v50  ;;  %93 = vmatmul.f32.vlgmr.msra.gmra.mxu0 %v15_v51 }
  0x23   :  { %112 = vmatpush.msra.mxu1 %v35_v52 }
  0x24   :  { %113 = vmatmul.f32.vlgmr.msra.gmra.mxu1 %v16_v53 }
  0x99   :  { %v154_v60 = vpop.f32.mrf.mxu3 }
  0x9f   :  { %v94_v55 = vpop.f32.mrf.mxu0 }
  0xa0   :  { %v95_v56 = vadd.f32 %v177_v54, %v94_v55 }
  0xa1   :  { %v114_v57 = vpop.f32.mrf.mxu1 }
  0xa2   :  { %v115_v58 = vadd.f32 %v114_v57, %v95_v56 }
  0xa5   :  { %v134_v59 = vpop.f32.mrf.mxu2 }
  0xa6   :  { %v135_v61 = vadd.f32 %v134_v59, %v115_v58 }
  0xa8   :  { %v155_v62 = vadd.f32 %v154_v60, %v135_v61 }
  0xaa   :  { %158 = vst.msk [vmem:[#allocation2] sm:$0xff] %vm157_vm1, %v155_v62 }
  0xab   :  { %169 = dma.vmem_to_hbm [thread:$0]  %s165_s14, 128, %s167_s0, [#allocation3]  }
  0xac   :  { %202 = dma.done.wait [#allocation3], 128  }
  0xad   :  { %203 = vsyncadd [#allocation3], 4294967168 }
  0xae   :  { %174 = vsyncpa [#allocation3], 1 }

</bundles_post_ra>
